<compile_context>
chip_gen: v7x
topology: tpu7x:2x2x1
jax: 0.10.0
libtpu: 0.0.40
codegen_flags: <defaults>
</compile_context>

<pallas_src>
import jax
import jax.numpy as jnp
from jax.experimental import pallas as pl
from jax.experimental.pallas import tpu as pltpu


def _chomp_copy_kernel(x_ref, o_ref):
    # Pure identity copy: the input BlockSpec already excludes the chomped tail.
    o_ref[...] = x_ref[...]


def _round_up(x: int, m: int) -> int:
    return ((x + m - 1) // m) * m


def chomp1d(x: jax.Array, chomp_size: int, *, tile_r: int = 512, tile_l: int = 2048) -> jax.Array:
    """Pallas implementation of Chomp1d.forward: x[:, :, :-chomp_size]."""
    assert chomp_size > 0, "chomp_size must be positive (matches x[:, :, :-c])"
    n, c, l = x.shape
    l_out = l - chomp_size
    assert l_out > 0, "chomp_size must be smaller than sequence length"

    rows = n * c
    itemsize = jnp.dtype(x.dtype).itemsize
    # Sublane multiple for this dtype: 8 for 4-byte, 16 for 2-byte, 32 for 1-byte.
    sub = max(8, 32 // itemsize)

    # Tiny-shape bypass: masked <128-lane stores + launch overhead dominate, and
    # an XLA slice fuses with neighbours.  Strictly faster for these shapes.
    if l_out < 128 or rows < sub:
        return x[:, :, :l_out]

    # Collapse (N, C, L) -> (N*C, L): the slice is only along the last axis, so
    # this reshape is contiguous/free and gives large lane-dense 2-D tiles.
    x2 = x.reshape(rows, l)

    # Lane block: multiple of 128 (Pallas masks the OOB tail of a partial block).
    bl = min(tile_l, _round_up(l_out, 128))
    # Row block: either a full tile (multiple of `sub`) or the full row extent.
    br = tile_r if rows >= tile_r else rows

    grid_r = pl.cdiv(rows, br)
    grid_l = pl.cdiv(l_out, bl)

    # Megacore (v7x): make sure at least one "parallel" axis has >= 2 blocks.
    if grid_r == 1 and grid_l == 1 and rows >= 2 * sub:
        br = _round_up(max(rows // 2, sub), sub)
        grid_r = pl.cdiv(rows, br)

    bytes_accessed = 2 * rows * l_out * itemsize  # one read + one write of payload

    out2 = pl.pallas_call(
        _chomp_copy_kernel,
        out_shape=jax.ShapeDtypeStruct((rows, l_out), x.dtype),
        grid_spec=pltpu.PrefetchScalarGridSpec(
            num_scalar_prefetch=0,
            grid=(grid_r, grid_l),
            # Blocks are indexed over the *output* length range, so the chomped
            # tail is never loaded (only a partial final block may peek into
            # it, and those lanes are masked out of the store).
            in_specs=[pl.BlockSpec((br, bl), lambda i, j: (i, j))],
            out_specs=pl.BlockSpec((br, bl), lambda i, j: (i, j)),
        ),
        compiler_params=pltpu.CompilerParams(
            dimension_semantics=("parallel", "parallel"),
            vmem_limit_bytes=32 * 1024 * 1024,
        ),
        cost_estimate=pl.CostEstimate(
            flops=0, transcendentals=0, bytes_accessed=bytes_accessed
        ),
    )(x2)

    return out2.reshape(n, c, l_out)


def _check(x, chomp_size):
    out = jax.block_until_ready(chomp1d(x, chomp_size))
    ref = x[:, :, :-chomp_size]
    assert out.shape == ref.shape, (out.shape, ref.shape)
    assert out.dtype == x.dtype
    assert jnp.array_equal(out, ref), "mismatch vs reference slice"


if __name__ == "__main__":
    key = jax.random.PRNGKey(0)
    k1, k2, k3, k4 = jax.random.split(key, 4)

    # 1) Tiny TCN-like shape (batch=2, channels=4, seq=16): takes the XLA
    #    fallback path (l_out < 128).
    _check(jax.random.normal(k1, (2, 4, 16), dtype=jnp.float32), 3)

    # 2) Pallas path, fully lane-dense: rows=16, l_out=256 (multiple of 128);
    #    megacore split gives grid (2, 1).
    _check(jax.random.normal(k2, (2, 8, 260), dtype=jnp.float32), 4)

    # 3) Pallas path with a masked lane tail: rows=32, l_out=513 -> bl=640.
    _check(jax.random.normal(k3, (2, 16, 645), dtype=jnp.float32), 132)

    # 4) bf16 path (sublane multiple 16), unaligned l_out.
    _check(jax.random.normal(k4, (2, 16, 300), dtype=jnp.bfloat16), 3)

    print("KERNEL_OK")
</pallas_src>

<mosaic_0001>
module attributes {stable_mosaic.version = 11 : i64} {
  func.func @_chomp_copy_kernel(%arg0: i32, %arg1: i32, %arg2: memref<8x256xf32, #tpu.memory_space<vmem>>, %arg3: memref<8x256xf32, #tpu.memory_space<vmem>>) attributes {dimension_semantics = [#tpu.dimension_semantics<parallel>, #tpu.dimension_semantics<parallel>], iteration_bounds = array<i64: 2, 1>, scalar_prefetch = 0 : i64, scratch_operands = 0 : i64, tpu.core_type = #tpu.core_type<tc>, window_params = [{transform_indices = @transform_0, window_bounds = array<i64: 8, 256>}, {transform_indices = @transform_1, window_bounds = array<i64: 8, 256>}]} {
    %c0 = arith.constant 0 : index
    %c0_0 = arith.constant 0 : index
    %0 = vector.load %arg2[%c0, %c0_0] : memref<8x256xf32, #tpu.memory_space<vmem>>, vector<8x256xf32>
    %c0_1 = arith.constant 0 : index
    %c0_2 = arith.constant 0 : index
    %1 = vector.load %arg3[%c0_1, %c0_2] : memref<8x256xf32, #tpu.memory_space<vmem>>, vector<8x256xf32>
    tpu.vector_store %arg3[%c0_1, %c0_2], %0 {strides = array<i32>} : memref<8x256xf32, #tpu.memory_space<vmem>>, vector<8x256xf32>,
    return
  }
  func.func @transform_0(%arg0: i32, %arg1: i32) -> (i32, i32) {
    %c0_i32 = arith.constant 0 : i32
    return %arg0, %arg1 : i32, i32
  }
  func.func @transform_1(%arg0: i32, %arg1: i32) -> (i32, i32) {
    %c0_i32 = arith.constant 0 : i32
    return %arg0, %arg1 : i32, i32
  }
}

</mosaic_0001>

<bundles_post_ra>
// kernel: tpu_custom_call.1
= control target key start
LH: loop header
LB: loop body
LE: loop exit
PB: predicated region body
PF: predicated region fallthrough
CT: control target
= control target key end

     0   :  { %6 = vsyncpa [#allocation3], 0  ;;  %s642_s0 = inlined_call_operand.hbm [shape: f32[16,260], index: 0, kind: input, shape index: {}]   ;;  %s643_s1 = inlined_call_operand.hbm [shape: f32[16,256], index: 1, kind: output, shape index: {}]  }
   0x1   :  { %8 = vsyncpa [#allocation3 + $0x1], 0 }
   0x2   :  { %9 = vsyncpa [#allocation4], 0 }
   0x3   :  { %11 = vsyncpa [#allocation4 + $0x1], 0  ;;  %s472_s6 = smov 0   ;;  %s474_s7 = smov 0  }
   0x4   :  { %s476_s8 = smov 0   ;;  %s478_s9 = smov 0  }
   0x5   :  { %s480_s10 = smov 0   ;;  %s482_s11 = smov 0  }
   0x6 LB: > { %s268_s12 = sadd.s32 4294967295, %s458_s11   ;;  %s269_s13 = sadd.s32 4294967294, %s458_s11   ;;  %s458_s11 = sphi %s482_s11, %s17_s11   ;;  %s454_s10 = sphi %s480_s10, %s658_s10   ;;  %s450_s9 = sphi %s478_s9, %s657_s9   ;;  %s446_s8 = sphi %s476_s8, %s656_s8   ;;  %s442_s7 = sphi %s474_s7, %s655_s7   ;;  %s438_s6 = sphi %s472_s6, %s654_s6  }
   0x7   : > { %s29_s14 = sadd.s32 1, %s454_s10  ;;  %s38_s15 = sadd.s32 1, %s446_s8 }
   0x8   : > { %p31_p0 = scmp.ge.s32.totalorder %s29_s14, 2  ;;  %p45_p1 = scmp.ne.s32.totalorder %s446_s8, %s442_s7 }
   0x9   : > { %p46_p2 = scmp.eq.s32.totalorder %s458_s11, 0  ;;  %p51_p3 = scmp.ne.s32.totalorder %s442_s7, %s438_s6 }
   0xa   : > { %s660_s14 = smov (%p31_p0, %s29_s14), 0  ;;  %p52_p5 = scmp.eq.s32.totalorder %s268_s12, 0 }
   0xb   : > { %p513_p4 = por %p46_p2, %p45_p1  ;;  %s33_s17 = ssub.s32 %s454_s10, %s660_s14 }
   0xc   : > { %p77_p6 = scmp.eq.s32.totalorder %s268_s12, 1  ;;  %p36_p7 = scmp.eq.s32.totalorder %s33_s17, 0 }
   0xd   : > { %p519_p8 = por %p52_p5, %p51_p3  ;;  %p83_p10 = scmp.eq.s32.totalorder %s269_s13, 1 }
   0xe   : > { %p523_p9 = por %p77_p6, %p45_p1  ;;  %p296_p13 = scmp.lt.s32.totalorder %s458_s11, 2 }
   0xf   : > { %s528_s20 = scalar_select %p36_p7, %s446_s8, %s38_s15  }
  0x10   : > { %s647_s19 = scalar_select %p523_p9, 1, 0 }
  0x11   : > { %p530_p11 = por %p83_p10, %p51_p3  ;;  %s103_s22 = sand.u32 1, %s446_s8  }
  0x12   : > { %s272_s23 = sshll.u32 %s103_s22, 4  ;;  %s283_s24 = smul.u32 384, %s454_s10 }
  0x13   : > { %s648_s21 = scalar_select %p530_p11, 1, 0 }
  0x14   : > { %s107_s25 = scalar_lea.vmem [#allocation2], %s272_s23  ;;  %p540_p0 = pnand %p296_p13, %p513_p4 }
  0x15   : > { %s123_s26 = sshll.u32 %s107_s25, 4  ;;  %s547_s30 = scalar_lea.hbm %s642_s0, %s283_s24  ;;  %s549_s26 = int_to_ptr.vmem [resolvable:$true] %s123_s26 }
  0x16   : > { %s104_s2 = scalar_lea.sflag [#allocation3], %s103_s22  ;;  %s346_s3 = scalar_lea.hbm %s547_s30, 256 }
  0x17   : > { %p347_p2 = scmp.ne.s32.totalorder %s547_s30, %s346_s3  ;;  %p348_p3 = pneg %p540_p0 }
  0x18   : > { %s351_s12 = scalar_lea.hbm %s642_s0, 768  ;;  %p352_p6 = scmp.lt.u32.totalorder %s547_s30, %s642_s0 }
  0x19   : > { %p349_p4 = pnand %p348_p3, %p347_p2  ;;  %p353_p7 = scmp.lt.u32.totalorder %s351_s12, %s346_s3 }
  0x1a   : > { %p355_p13 = scmp.lt.u32.totalorder %s346_s3, %s547_s30 }
  0x1b   : > { %p350_p5 = pneg %p349_p4  ;;  %p354_p10 = por %p353_p7, %p352_p6 }
  0x1d   : > { %p356_p12 = por %p355_p13, %p354_p10 }
  0x1f   : > { %p357_p1 = pnand %p356_p12, %p350_p5 }
  0x21   : > { %360 = shalt.err (!%p357_p1)
}
  0x22   : > { %s361_s16 = scalar_lea.vmem %s549_s26, 256  ;;  %s460_s17 = smov [#allocation2]  }
  0x23   : > { %p362_p2 = scmp.ne.s32.totalorder %s549_s26, %s361_s16  ;;  %s366_s22 = sshll.u32 %s460_s17, 4  ;;  %s367_s22 = int_to_ptr.vmem [resolvable:$false] %s366_s22 }
  0x24   : > { %s368_s23 = scalar_lea.vmem %s367_s22, 512  ;;  %p369_p9 = scmp.lt.s32.totalorder %s549_s26, %s367_s22 }
  0x25   : > { %p364_p4 = pnand %p362_p2, %p348_p3  ;;  %p370_p6 = scmp.lt.s32.totalorder %s368_s23, %s361_s16 }
  0x27   : > { %p365_p11 = pneg %p364_p4  ;;  %p371_p7 = por %p370_p6, %p369_p9 }
  0x29   : > { %p372_p10 = pnand %p371_p7, %p365_p11 }
  0x2b   : > { %375 = shalt.err (!%p372_p10)
}
  0x2c   : > { %291 = dma.hbm_to_vmem [thread:$0]  (!%p540_p0), %s547_s30, 256, %s549_s26, %s104_s2  }
  0x2d   : > { %p128_p12 = scmp.lt.s32.totalorder %s458_s11, 3  ;;  %p650_p1 = scmp.ge.s32.totalorder %s458_s11, 1 }
  0x2f   : > { %p129_p3 = pnand %p650_p1, %p128_p12 }
  0x30   : > { %s581_s24 = sand.u32 (!%p129_p3), 1, %s442_s7  }
  0x31   : > { %132 = sbr.rel (%p129_p3) target bundleno = 83 (0x53), region = 24  ;;  %s275_s25 = sshll.u32 (!%p129_p3), %s581_s24, 4 }
  0x32   : > { %s135_s28 = scalar_lea.sflag (!%p129_p3), [#allocation3], %s581_s24  ;;  %s138_s29 = scalar_lea.vmem (!%p129_p3), [#allocation2], %s275_s25 }
  0x38   : > { %429 = dma.done.wait (%p519_p8), %s135_s28, 256  }
  0x39   : > { %431 = vsyncadd (%p519_p8), %s135_s28, 4294967040  ;;  %s156_s26 = scalar_lea.vmem [#allocation5], %s275_s25  ;;  %s282_s30 = sshll.u32 %s450_s9, 8  ;;  %v163_v0 = vld [vmem:[%s138_s29] sm:$0xff]  ;;  %v164_v1 = vld [vmem:[%s138_s29 + $0x8] sm:$0xff] }
  0x3a   : > { %s184_s27 = sshll.u32 %s156_s26, 4  ;;  %s595_s4 = scalar_lea.hbm %s643_s1, %s282_s30  ;;  %165 = vst [vmem:[%s156_s26] sm:$0xff] %v163_v0  ;;  %166 = vst [vmem:[%s156_s26 + $0x8] sm:$0xff] %v164_v1  ;;  %s590_s27 = int_to_ptr.vmem [resolvable:$true] %s184_s27 }
  0x3b   : > { %s168_s18 = scalar_lea.sflag [#allocation4], %s581_s24  ;;  %s376_s5 = scalar_lea.vmem %s590_s27, 256 }
  0x3c   : > { %p377_p8 = scmp.ne.s32.totalorder %s590_s27, %s376_s5  ;;  %p651_p9 = scmp.ne.s32.totalorder %s647_s19, 0 }
  0x3d   : > { %s461_s9 = smov [#allocation5]  }
  0x3e   : > { %p378_p11 = pnand %p377_p8, %p651_p9  ;;  %s380_s12 = sshll.u32 %s461_s9, 4  ;;  %s381_s12 = int_to_ptr.vmem [resolvable:$false] %s380_s12 }
  0x3f   : > { %s382_s13 = scalar_lea.vmem %s381_s12, 512  ;;  %p383_p5 = scmp.lt.s32.totalorder %s590_s27, %s381_s12 }
  0x40   : > { %p379_p0 = pneg %p378_p11  ;;  %p384_p13 = scmp.lt.s32.totalorder %s382_s13, %s376_s5 }
  0x42   : > { %p385_p2 = por %p384_p13, %p383_p5 }
  0x44   : > { %p386_p4 = pnand %p385_p2, %p379_p0 }
  0x46   : > { %389 = shalt.err (!%p386_p4)
}
  0x47   : > { %s390_s15 = scalar_lea.hbm %s595_s4, 256  ;;  %s394_s22 = scalar_lea.hbm %s643_s1, 512 }
  0x48   : > { %p391_p6 = scmp.ne.s32.totalorder %s595_s4, %s390_s15  ;;  %p395_p12 = scmp.lt.u32.totalorder %s595_s4, %s643_s1 }
  0x49   : > { %p396_p1 = scmp.lt.u32.totalorder %s394_s22, %s390_s15  ;;  %p398_p8 = scmp.lt.u32.totalorder %s390_s15, %s595_s4 }
  0x4a   : > { %p392_p7 = pnand %p391_p6, %p651_p9 }
  0x4b   : > { %p397_p3 = por %p396_p1, %p395_p12 }
  0x4c   : > { %p393_p10 = pneg %p392_p7 }
  0x4d   : > { %p399_p11 = por %p398_p8, %p397_p3 }
  0x4f   : > { %p400_p0 = pnand %p399_p11, %p393_p10 }
  0x51   : > { %403 = shalt.err (!%p400_p0)
}
  0x52   : > { %286 = dma.vmem_to_hbm [thread:$0]  (%p651_p9), %s590_s27, 256, %s595_s4, %s168_s18  }
  0x53 PF: > { %s196_s25 = sand.u32 1, %s438_s6   ;;  %p652_p5 = scmp.ne.s32.totalorder %s648_s21, 0 }
  0x54   : > { %p653_p13 = scmp.ge.s32.totalorder %s458_s11, 2  ;;  %s197_s28 = scalar_lea.sflag [#allocation4], %s196_s25 }
  0x56   : > { %p293_p2 = pnand %p653_p13, %p652_p5 }
  0x58   : > { %433 = dma.done.wait (!%p293_p2), %s197_s28, 256  }
  0x59   : > { %435 = vsyncadd (!%p293_p2), %s197_s28, 4294967040  ;;  %s17_s11 = sadd.s32 1, %s458_s11   ;;  %s654_s6 = smov %s442_s7 }
  0x5a   : > { %p14_p4 = scmp.ge.s32.totalorder %s17_s11, 4   ;;  %s655_s7 = smov %s446_s8 }
  0x5b   : > { %s656_s8 = smov %s528_s20  ;;  %s657_s9 = smov %s454_s10 }
  0x5c   : > { %s658_s10 = smov %s660_s14  ;;  %16 = sbr.rel (!%p14_p4) target bundleno = 6 (0x6), region = 69 }
  0x63   :  { %202 = vsyncpa [#allocation3], 1 }
  0x64   :  { %204 = vsyncpa [#allocation3 + $0x1], 1 }
  0x65   :  { %205 = vsyncpa [#allocation4], 1 }
  0x66   :  { %207 = vsyncpa [#allocation4 + $0x1], 1 }

</bundles_post_ra>
